<compile_context>
chip_gen: v6e
topology: v6e:2x2x1
jax: 0.10.0
libtpu: 0.0.40
codegen_flags: <defaults>
</compile_context>

<pallas_src>
import math

import jax
import jax.numpy as jnp
from jax.experimental import pallas as pl
from jax.experimental.pallas import tpu as pltpu


# ~2 MiB per x block: double-buffered x/out/pe blocks (~<=10 MiB total) stay
# under every generation's scoped-VMEM default (v5e 16 MiB, v6e/v7x 32 MiB) and
# far under v7x's 64 MiB physical VMEM.
_TARGET_BLOCK_BYTES = 2 * 1024 * 1024
_MIN_VMEM_LIMIT = 16 * 1024 * 1024
_MAX_VMEM_LIMIT = 100 * 1024 * 1024


def build_pe_table(d_model: int, max_len: int = 5000,
                   dtype=jnp.float32) -> jnp.ndarray:
    """Positional-encoding buffer [max_len, 1, d_model], built once at setup in
    the model dtype (hoists the dtype cast out of the forward pass)."""
    position = jnp.arange(max_len, dtype=jnp.float32)[:, None]            # [L, 1]
    div_term = jnp.exp(
        jnp.arange(0, d_model, 2, dtype=jnp.float32)
        * (-math.log(10000.0) / d_model)
    )                                                                      # [ceil(D/2)]
    angles = position * div_term                                           # [L, ceil(D/2)]
    pe = jnp.zeros((max_len, d_model), dtype=jnp.float32)
    pe = pe.at[:, 0::2].set(jnp.sin(angles))
    pe = pe.at[:, 1::2].set(jnp.cos(angles[:, : d_model // 2]))            # odd-D safe
    return pe[:, None, :].astype(dtype)                                    # [L, 1, D]


def _pe_add_kernel(x_ref, pe_ref, o_ref):
    # x_ref: (t, B, D); pe_ref: (t, 1, D) -> broadcasts over the batch (sublane) dim.
    o_ref[...] = x_ref[...] + pe_ref[...]


def _choose_seq_tile(S: int, row_bytes: int) -> int:
    """Rows (seq positions) per block: largest multiple of 8 under the ~2 MiB
    budget, preferring >=2 grid steps (enough for double-buffered DMA overlap
    and the v7x 2-TC parallel split).  The grid uses cdiv, so the tile does NOT
    need to divide S; Pallas masks the ragged last block."""
    if S <= 8:
        return S
    budget_rows = max(8, (_TARGET_BLOCK_BYTES // max(row_bytes, 1)) // 8 * 8)
    two_step_rows = ((S + 1) // 2 + 7) // 8 * 8   # ceil(S/2), rounded up to mult of 8
    return max(8, min(budget_rows, two_step_rows, S))


def positional_encoding_forward(x: jnp.ndarray, pe: jnp.ndarray,
                                *, seq_tile: int | None = None) -> jnp.ndarray:
    """x: [S, B, D]; pe: [max_len, 1, D].  Returns x + pe[:S] (broadcast over B)."""
    S, B, D = x.shape
    max_len = pe.shape[0]
    assert pe.shape == (max_len, 1, D) and S <= max_len

    if pe.dtype != x.dtype:
        # Fallback only: setup should build pe in the model dtype (build_pe_table).
        # Note: PyTorch would upcast the add to f32 instead; difference is
        # negligible for positional encodings.
        pe = pe.astype(x.dtype)

    itemsize = jnp.dtype(x.dtype).itemsize
    row_bytes = B * D * itemsize
    if seq_tile is None:
        seq_tile = _choose_seq_tile(S, row_bytes)
    grid = (pl.cdiv(S, seq_tile),)

    # VMEM sizing: (x + out + pe) blocks, double-buffered by the pipeline.
    block_bytes = seq_tile * (2 * B * D + D) * itemsize
    vmem_limit = int(min(max(2 * block_bytes + (2 << 20), _MIN_VMEM_LIMIT),
                         _MAX_VMEM_LIMIT))
    assert 2 * block_bytes <= vmem_limit, "double-buffered blocks exceed VMEM limit"

    cost = pl.CostEstimate(
        flops=S * B * D,
        transcendentals=0,
        # read x + write out + read only the used S*D slice of pe
        bytes_accessed=(2 * S * B * D + S * D) * itemsize,
    )

    # No input_output_aliases: x is generally still live at the caller, and a
    # non-donated alias would make XLA insert a defensive full copy of x.
    # Callers that truly donate x should do so via jit donate_argnums.
    #
    # TODO(synk): for very small / non-multiple-of-128 D on v5e (1 store slot),
    # a fully lane-dense 1-D retiling of x/out could further improve store
    # density; skipped here because it would require materializing pe over batch.
    return pl.pallas_call(
        _pe_add_kernel,
        out_shape=jax.ShapeDtypeStruct((S, B, D), x.dtype),
        grid_spec=pltpu.PrefetchScalarGridSpec(
            num_scalar_prefetch=0,
            grid=grid,
            in_specs=[
                # Full-(B, D) blocks: contiguous HBM DMA (no strided descriptors),
                # legal for any (B, D) since the block dims equal the array dims.
                pl.BlockSpec((seq_tile, B, D), lambda i: (i, 0, 0)),
                # pe keeps its [max_len, 1, D] layout (no wrapper slice/broadcast);
                # only ~S*D elements of pe are ever DMA'd.
                pl.BlockSpec((seq_tile, 1, D), lambda i: (i, 0, 0)),
            ],
            out_specs=pl.BlockSpec((seq_tile, B, D), lambda i: (i, 0, 0)),
        ),
        compiler_params=pltpu.CompilerParams(
            dimension_semantics=("parallel",),
            vmem_limit_bytes=vmem_limit,
        ),
        cost_estimate=cost,
    )(x, pe)


if __name__ == "__main__":
    key = jax.random.PRNGKey(0)
    k1, k2, k3 = jax.random.split(key, 3)

    # Case 1: small, lane-sparse trailing dims (B=2, D=32), single grid step.
    S1, B1, D1, L1 = 8, 2, 32, 64
    x1 = jax.random.normal(k1, (S1, B1, D1), dtype=jnp.float32)
    pe1 = build_pe_table(D1, L1, dtype=x1.dtype)
    out1 = jax.block_until_ready(positional_encoding_forward(x1, pe1))
    ref1 = x1 + pe1[:S1]
    assert out1.shape == (S1, B1, D1)
    assert jnp.allclose(out1, ref1, atol=1e-6), "mismatch vs. reference (case 1)"

    # Case 2: sublane/lane-dense trailing dims (B=8, D=128), 2 pipelined grid steps.
    S2, B2, D2, L2 = 16, 8, 128, 32
    x2 = jax.random.normal(k2, (S2, B2, D2), dtype=jnp.float32)
    pe2 = build_pe_table(D2, L2, dtype=x2.dtype)
    out2 = jax.block_until_ready(positional_encoding_forward(x2, pe2))
    ref2 = x2 + pe2[:S2]
    assert out2.shape == (S2, B2, D2)
    assert jnp.allclose(out2, ref2, atol=1e-6), "mismatch vs. reference (case 2)"

    # Case 3: awkward shapes (S not a multiple of the tile, B not a multiple of 8)
    # -> exercises the cdiv grid / ragged, masked last block.
    S3, B3, D3, L3 = 13, 3, 48, 40
    x3 = jax.random.normal(k3, (S3, B3, D3), dtype=jnp.float32)
    pe3 = build_pe_table(D3, L3, dtype=x3.dtype)
    out3 = jax.block_until_ready(positional_encoding_forward(x3, pe3))
    ref3 = x3 + pe3[:S3]
    assert out3.shape == (S3, B3, D3)
    assert jnp.allclose(out3, ref3, atol=1e-6), "mismatch vs. reference (case 3)"

    print("KERNEL_OK")
</pallas_src>

<mosaic_0001>
module attributes {stable_mosaic.version = 11 : i64} {
  func.func @_pe_add_kernel(%arg0: i32, %arg1: memref<8x2x32xf32, #tpu.memory_space<vmem>>, %arg2: memref<8x1x32xf32, #tpu.memory_space<vmem>>, %arg3: memref<8x2x32xf32, #tpu.memory_space<vmem>>) attributes {dimension_semantics = [#tpu.dimension_semantics<parallel>], iteration_bounds = array<i64: 1>, scalar_prefetch = 0 : i64, scratch_operands = 0 : i64, tpu.core_type = #tpu.core_type<tc>, window_params = [{transform_indices = @transform_0, window_bounds = array<i64: 8, 2, 32>}, {transform_indices = @transform_1, window_bounds = array<i64: 8, 1, 32>}, {transform_indices = @transform_2, window_bounds = array<i64: 8, 2, 32>}]} {
    %c0 = arith.constant 0 : index
    %c0_0 = arith.constant 0 : index
    %c0_1 = arith.constant 0 : index
    %0 = vector.load %arg1[%c0, %c0_0, %c0_1] : memref<8x2x32xf32, #tpu.memory_space<vmem>>, vector<8x2x32xf32>
    %c0_2 = arith.constant 0 : index
    %c0_3 = arith.constant 0 : index
    %c0_4 = arith.constant 0 : index
    %1 = vector.load %arg2[%c0_2, %c0_3, %c0_4] : memref<8x1x32xf32, #tpu.memory_space<vmem>>, vector<8x1x32xf32>
    %2 = vector.broadcast %1 : vector<8x1x32xf32> to vector<8x2x32xf32>
    %3 = arith.addf %0, %2 : vector<8x2x32xf32>
    %c0_5 = arith.constant 0 : index
    %c0_6 = arith.constant 0 : index
    %c0_7 = arith.constant 0 : index
    %4 = vector.load %arg3[%c0_5, %c0_6, %c0_7] : memref<8x2x32xf32, #tpu.memory_space<vmem>>, vector<8x2x32xf32>
    tpu.vector_store %arg3[%c0_5, %c0_6, %c0_7], %3 {strides = array<i32>} : memref<8x2x32xf32, #tpu.memory_space<vmem>>, vector<8x2x32xf32>,
    return
  }
  func.func @transform_0(%arg0: i32) -> (i32, i32, i32) {
    %c0_i32 = arith.constant 0 : i32
    %c0_i32_0 = arith.constant 0 : i32
    %c0_i32_1 = arith.constant 0 : i32
    return %arg0, %c0_i32, %c0_i32_0 : i32, i32, i32
  }
  func.func @transform_1(%arg0: i32) -> (i32, i32, i32) {
    %c0_i32 = arith.constant 0 : i32
    %c0_i32_0 = arith.constant 0 : i32
    %c0_i32_1 = arith.constant 0 : i32
    return %arg0, %c0_i32, %c0_i32_0 : i32, i32, i32
  }
  func.func @transform_2(%arg0: i32) -> (i32, i32, i32) {
    %c0_i32 = arith.constant 0 : i32
    %c0_i32_0 = arith.constant 0 : i32
    %c0_i32_1 = arith.constant 0 : i32
    return %arg0, %c0_i32, %c0_i32_0 : i32, i32, i32
  }
}

</mosaic_0001>

<bundles_post_ra>
// kernel: tpu_custom_call.1
= control target key start
LH: loop header
LB: loop body
LE: loop exit
PB: predicated region body
PF: predicated region fallthrough
CT: control target
= control target key end

     0   :  { %vm84_vm0 = vcmask 254976   ;;  %s219_s0 = inlined_call_operand.vmem [shape: f32[8,2,32], index: 0, kind: input, shape index: {}]   ;;  %s220_s1 = inlined_call_operand.vmem [shape: f32[64,1,32], index: 1, kind: input, shape index: {}]   ;;  %s221_s2 = inlined_call_operand.hbm [shape: f32[8,2,32], index: 2, kind: output, shape index: {}]  }
   0x1   :  { %v12_v0 = vld [vmem:[%s219_s0] sm:$0x3]  ;;  %v13_v3 = vld [vmem:[%s219_s0 + $0x2] sm:$0x3]  ;;  %v14_v5 = vld [vmem:[%s219_s0 + $0x4] sm:$0x3] }
   0x2   :  { %v109_v1 = vld [vmem:[%s220_s1] ss:$0 sm:$0xff]  ;;  %v110_v4 = vld [vmem:[%s220_s1 + $0x1] ss:$0 sm:$0xff]  ;;  %v111_v7 = vld [vmem:[%s220_s1 + $0x2] ss:$0 sm:$0xff] }
   0x3   :  { %v76_v2 = vadd.f32 %v109_v1, %v12_v0  ;;  %v77_v6 = vadd.f32 %v110_v4, %v13_v3  ;;  %v15_v8 = vld [vmem:[%s219_s0 + $0x6] sm:$0x3]  ;;  %v112_v9 = vld [vmem:[%s220_s1 + $0x3] ss:$0 sm:$0xff]  ;;  %v78_v10 = vadd.f32 %v111_v7, %v14_v5  ;;  %v16_v12 = vld [vmem:[%s219_s0 + $0x8] sm:$0x3] }
   0x4   :  { %v79_v11 = vadd.f32 %v112_v9, %v15_v8  ;;  %v113_v13 = vld [vmem:[%s220_s1 + $0x4] ss:$0 sm:$0xff]  ;;  %v17_v14 = vld [vmem:[%s219_s0 + $0xa] sm:$0x3]  ;;  %v114_v16 = vld [vmem:[%s220_s1 + $0x5] ss:$0 sm:$0xff] }
   0x5   :  { %85 = vst.msk [vmem:[#allocation2] sm:$0x3] %vm84_vm0, %v76_v2  ;;  %86 = vst.msk [vmem:[#allocation2 + $0x2] sm:$0x3] %vm84_vm0, %v77_v6  ;;  %v80_v15 = vadd.f32 %v113_v13, %v16_v12  ;;  %v18_v17 = vld [vmem:[%s219_s0 + $0xc] sm:$0x3]  ;;  %v81_v19 = vadd.f32 %v114_v16, %v17_v14 }
   0x6   :  { %v115_v18 = vld [vmem:[%s220_s1 + $0x6] ss:$0 sm:$0xff]  ;;  %87 = vst.msk [vmem:[#allocation2 + $0x4] sm:$0x3] %vm84_vm0, %v78_v10  ;;  %88 = vst.msk [vmem:[#allocation2 + $0x6] sm:$0x3] %vm84_vm0, %v79_v11 }
   0x7   :  { %v82_v20 = vadd.f32 %v115_v18, %v18_v17  ;;  %v19_v21 = vld [vmem:[%s219_s0 + $0xe] sm:$0x3]  ;;  %v116_v22 = vld [vmem:[%s220_s1 + $0x7] ss:$0 sm:$0xff] }
   0x8   :  { %7 = vsyncpa [#allocation3], 0  ;;  %89 = vst.msk [vmem:[#allocation2 + $0x8] sm:$0x3] %vm84_vm0, %v80_v15  ;;  %v83_v23 = vadd.f32 %v116_v22, %v19_v21  ;;  %s142_s13 = smov [#allocation2]  }
   0x9   :  { %s98_s14 = sshll.u32 %s142_s13, 4  ;;  %90 = vst.msk [vmem:[#allocation2 + $0xa] sm:$0x3] %vm84_vm0, %v81_v19  ;;  %91 = vst.msk [vmem:[#allocation2 + $0xc] sm:$0x3] %vm84_vm0, %v82_v20  ;;  %s99_s14 = int_to_ptr.vmem [resolvable:$true] %s98_s14 }
   0xa   :  { %92 = vst.msk [vmem:[#allocation2 + $0xe] sm:$0x3] %vm84_vm0, %v83_v23  ;;  %s120_s15 = scalar_lea.vmem %s99_s14, 256  ;;  %p125_p1 = scmp.lt.s32.totalorder %s99_s14, %s99_s14 }
   0xb   :  { %p121_p0 = scmp.ne.s32.totalorder %s99_s14, %s120_s15  ;;  %p126_p2 = scmp.lt.s32.totalorder %s120_s15, %s120_s15 }
   0xd   :  { %p127_p3 = por %p126_p2, %p125_p1 }
   0xf   :  { %p128_p4 = pnand %p127_p3, %p121_p0 }
  0x11   :  { %131 = shalt.err (!%p128_p4)
}
  0x12   :  { %s143_s0 = smov 32   ;;  %s144_s1 = smov 2  }
  0x13   :  { %104 = dma.vmem_to_hbm [thread:$0]  %s99_s14, 256, %s221_s2, [#allocation3], %s143_s0, %s143_s0, %s144_s1  }
  0x14   :  { %140 = dma.done.wait [#allocation3], 256  }
  0x15   :  { %141 = vsyncadd [#allocation3], 4294967040 }
  0x16   :  { %108 = vsyncpa [#allocation3], 1 }

</bundles_post_ra>
